<compile_context>
chip_gen: v5e
topology: v5e:2x2
jax: 0.10.0
libtpu: 0.0.40
codegen_flags: <defaults>
</compile_context>

<pallas_src>
import functools

import jax
import jax.numpy as jnp
from jax.experimental import pallas as pl
from jax.experimental.pallas import tpu as pltpu


def _round_up(x, m):
    return (x + m - 1) // m * m


# ----------------------------------------------------------------------------
# Fused kernel: conv(im2col matmul) + ReLU + GAP + slice-mean + classifier.
# ----------------------------------------------------------------------------
def fused_kernel(patch_ref, wconv_ref, wcls_ref, bias_ref, out_ref, *,
                 batch_block, rows_per_batch):
    # patch_ref: (batch_block * rows_per_batch, K_pad)  im2col rows (bf16/f32)
    # wconv_ref: (K_pad, Cout_pad)                      conv weight (bf16/f32)
    # wcls_ref:  (Cout_pad, C_pad)                      classifier weight (f32)
    # bias_ref:  (1, C_pad)                             classifier bias (f32)
    # out_ref:   (1, batch_block, C_pad)                logits (f32)

    # 3x3 conv (pad=1) as a single im2col matmul; f32 accumulation on the MXU.
    acc = jnp.dot(patch_ref[...], wconv_ref[...],
                  preferred_element_type=jnp.float32)       # (bb*rows, Cout_pad)
    acc = jnp.maximum(acc, 0.0)                              # ReLU (f32 on VPU)

    # AdaptiveAvgPool2d(1,1) + mean over slices == mean over all S*H*W
    # positions of each batch element (exact, since everything is linear).
    inv = 1.0 / rows_per_batch
    if batch_block == 1:
        feats = jnp.sum(acc, axis=0, keepdims=True) * inv    # (1, Cout_pad)
    else:
        feats = jnp.sum(
            acc.reshape(batch_block, rows_per_batch, acc.shape[-1]),
            axis=1) * inv                                     # (bb, Cout_pad)

    # TODO(synk): Dropout is identity at inference; training-mode dropout not modeled.
    logits = jnp.dot(feats, wcls_ref[...],
                     preferred_element_type=jnp.float32) + bias_ref[...]
    out_ref[...] = logits[None]                               # (1, bb, C_pad) lane-dense store


# ----------------------------------------------------------------------------
# Wrapper: lane-dense im2col layout prep + single pallas_call.
# ----------------------------------------------------------------------------
def majority_voting_3d(x, conv_w, cls_w, cls_b, *, num_slices, batch_block=1,
                       compute_dtype=jnp.bfloat16):
    """x: (B, S, 3, H, W) float32 (PyTorch NCHW convention per slice)."""
    B, S, Cin, H, W = x.shape
    assert S == num_slices
    assert B % batch_block == 0
    Cout = conv_w.shape[3]
    num_classes = cls_w.shape[1]

    N = B * S
    K = 9 * Cin
    K_pad = _round_up(K, 128)
    Cout_pad = _round_up(Cout, 128)
    C_pad = _round_up(num_classes, 128)
    rows_per_batch = S * H * W
    num_blocks = B // batch_block
    block_rows = batch_block * rows_per_batch

    # ---- layout prep (one fused XLA gather/reshape chain feeding the kernel) ----
    x_nhwc = x.reshape(N, Cin, H, W).transpose(0, 2, 3, 1)          # (N, H, W, Cin)
    xp = jnp.pad(x_nhwc, ((0, 0), (1, 1), (1, 1), (0, 0)))          # SAME padding
    taps = [xp[:, dh:dh + H, dw:dw + W, :] for dh in range(3) for dw in range(3)]
    patches = jnp.stack(taps, axis=3).reshape(N * H * W, K)         # (N*H*W, 27)
    patches = jnp.pad(patches, ((0, 0), (0, K_pad - K))).astype(compute_dtype)

    wconv = conv_w.reshape(K, Cout)                                 # (27, Cout), same tap order
    wconv = jnp.pad(wconv, ((0, K_pad - K), (0, Cout_pad - Cout))).astype(compute_dtype)

    wcls = jnp.pad(cls_w, ((0, Cout_pad - Cout),
                           (0, C_pad - num_classes))).astype(jnp.float32)
    bcls = jnp.pad(cls_b.reshape(1, num_classes),
                   ((0, 0), (0, C_pad - num_classes))).astype(jnp.float32)

    kernel = functools.partial(fused_kernel, batch_block=batch_block,
                               rows_per_batch=rows_per_batch)

    out = pl.pallas_call(
        kernel,
        out_shape=jax.ShapeDtypeStruct((num_blocks, batch_block, C_pad), jnp.float32),
        grid=(num_blocks,),
        in_specs=[
            pl.BlockSpec((block_rows, K_pad), lambda i: (i, 0)),    # im2col rows of this block
            pl.BlockSpec((K_pad, Cout_pad), lambda i: (0, 0)),      # conv weight (resident)
            pl.BlockSpec((Cout_pad, C_pad), lambda i: (0, 0)),      # classifier weight (resident)
            pl.BlockSpec((1, C_pad), lambda i: (0, 0)),             # classifier bias (resident)
        ],
        out_specs=pl.BlockSpec((1, batch_block, C_pad), lambda i: (i, 0, 0)),
        compiler_params=pltpu.CompilerParams(
            dimension_semantics=("parallel",)),                      # >=2 steps -> v7x 2 TCs
    )(patches, wconv, wcls, bcls)

    return out.reshape(B, C_pad)[:, :num_classes]


# ----------------------------------------------------------------------------
# Pure-JAX reference for validation.
# ----------------------------------------------------------------------------
def reference(x, conv_w, cls_w, cls_b, *, num_slices):
    B, S, Cin, H, W = x.shape
    x_flat = x.reshape(B * S, Cin, H, W).transpose(0, 2, 3, 1)
    y = jax.lax.conv_general_dilated(
        x_flat, conv_w, window_strides=(1, 1), padding="SAME",
        dimension_numbers=("NHWC", "HWIO", "NHWC"))
    y = jnp.maximum(y, 0.0)
    feat = jnp.mean(y, axis=(1, 2))                                  # (B*S, Cout)
    logits = feat @ cls_w + cls_b[0]                                 # (B*S, C)
    return jnp.mean(logits.reshape(B, S, -1), axis=1)


if __name__ == "__main__":
    # Small, module-consistent shapes.
    batch, num_slices, Cin, H, W = 2, 4, 3, 16, 16
    embedding_dim, num_classes = 32, 5

    key = jax.random.PRNGKey(0)
    kx, kw, kc, kb = jax.random.split(key, 4)

    x = jax.random.normal(kx, (batch, num_slices, Cin, H, W), jnp.float32)
    # Backbone conv weight, layout (kh, kw, Cin, Cout).
    conv_w = 0.1 * jax.random.normal(kw, (3, 3, Cin, embedding_dim), jnp.float32)
    # Classifier: PyTorch Linear weight (num_classes, embedding_dim) stored transposed.
    cls_w = 0.1 * jax.random.normal(kc, (embedding_dim, num_classes), jnp.float32)
    cls_b = 0.1 * jax.random.normal(kb, (1, num_classes), jnp.float32)

    ref = reference(x, conv_w, cls_w, cls_b, num_slices=num_slices)

    # f32 MXU-input path: must match the f32 reference tightly.
    out_f32 = majority_voting_3d(x, conv_w, cls_w, cls_b, num_slices=num_slices,
                                 compute_dtype=jnp.float32)
    out_f32 = jax.block_until_ready(out_f32)
    assert out_f32.shape == (batch, num_classes)
    assert jnp.allclose(out_f32, ref, atol=1e-4, rtol=1e-4), (out_f32, ref)

    # Default bf16 MXU-input path (v6e/v7x fast path, f32 accumulation): looser tol.
    out_bf16 = majority_voting_3d(x, conv_w, cls_w, cls_b, num_slices=num_slices)
    out_bf16 = jax.block_until_ready(out_bf16)
    assert out_bf16.shape == (batch, num_classes)
    assert jnp.allclose(out_bf16, ref, atol=3e-2, rtol=3e-2), (out_bf16, ref)

    print("KERNEL_OK")
</pallas_src>

<mosaic_0001>
module attributes {stable_mosaic.version = 11 : i64} {
  func.func @fused_kernel(%arg0: i32, %arg1: memref<1024x128xf32, #tpu.memory_space<vmem>>, %arg2: memref<128x128xf32, #tpu.memory_space<vmem>>, %arg3: memref<128x128xf32, #tpu.memory_space<vmem>>, %arg4: memref<1x128xf32, #tpu.memory_space<vmem>>, %arg5: memref<1x1x128xf32, #tpu.memory_space<vmem>>) attributes {dimension_semantics = [#tpu.dimension_semantics<parallel>], iteration_bounds = array<i64: 2>, scalar_prefetch = 0 : i64, scratch_operands = 0 : i64, tpu.core_type = #tpu.core_type<tc>, window_params = [{transform_indices = @transform_0, window_bounds = array<i64: 1024, 128>}, {pipeline_mode = #tpu.pipeline_mode<synchronous>, transform_indices = @transform_1, window_bounds = array<i64: 128, 128>}, {pipeline_mode = #tpu.pipeline_mode<synchronous>, transform_indices = @transform_2, window_bounds = array<i64: 128, 128>}, {pipeline_mode = #tpu.pipeline_mode<synchronous>, transform_indices = @transform_3, window_bounds = array<i64: 1, 128>}, {transform_indices = @transform_4, window_bounds = array<i64: 1, 1, 128>}]} {
    %c0 = arith.constant 0 : index
    %c0_0 = arith.constant 0 : index
    %0 = vector.load %arg1[%c0, %c0_0] : memref<1024x128xf32, #tpu.memory_space<vmem>>, vector<1024x128xf32>
    %c0_1 = arith.constant 0 : index
    %c0_2 = arith.constant 0 : index
    %1 = vector.load %arg2[%c0_1, %c0_2] : memref<128x128xf32, #tpu.memory_space<vmem>>, vector<128x128xf32>
    %cst = arith.constant dense<0.000000e+00> : vector<1024x128xf32>
    %2 = tpu.matmul %0, %1, %cst {dimension_numbers = #tpu.dot_dimension_numbers<[1], [0], [0], [1], [0, 0, 1, 1], [], []>} : vector<1024x128xf32>, vector<128x128xf32>, vector<1024x128xf32> -> vector<1024x128xf32>
    %cst_3 = arith.constant 0.000000e+00 : f32
    %3 = vector.broadcast %cst_3 : f32 to vector<1024x128xf32>
    %4 = arith.maximumf %2, %3 : vector<1024x128xf32>
    %cst_4 = arith.constant dense<0.000000e+00> : vector<128xf32>
    %5 = vector.multi_reduction <add>, %4, %cst_4 [0] : vector<1024x128xf32> to vector<128xf32>
    %6 = vector.shape_cast %5 : vector<128xf32> to vector<1x128xf32>
    %cst_5 = arith.constant 9.765625E-4 : f32
    %7 = vector.broadcast %cst_5 : f32 to vector<1x128xf32>
    %8 = arith.mulf %6, %7 : vector<1x128xf32>
    %c0_6 = arith.constant 0 : index
    %c0_7 = arith.constant 0 : index
    %9 = vector.load %arg3[%c0_6, %c0_7] : memref<128x128xf32, #tpu.memory_space<vmem>>, vector<128x128xf32>
    %cst_8 = arith.constant dense<0.000000e+00> : vector<1x128xf32>
    %10 = tpu.matmul %8, %9, %cst_8 {dimension_numbers = #tpu.dot_dimension_numbers<[1], [0], [0], [1], [0, 0, 1, 1], [], []>} : vector<1x128xf32>, vector<128x128xf32>, vector<1x128xf32> -> vector<1x128xf32>
    %c0_9 = arith.constant 0 : index
    %c0_10 = arith.constant 0 : index
    %11 = vector.load %arg4[%c0_9, %c0_10] : memref<1x128xf32, #tpu.memory_space<vmem>>, vector<1x128xf32>
    %12 = arith.addf %10, %11 : vector<1x128xf32>
    %13 = vector.shape_cast %12 : vector<1x128xf32> to vector<1x1x128xf32>
    %c0_11 = arith.constant 0 : index
    %c0_12 = arith.constant 0 : index
    %c0_13 = arith.constant 0 : index
    %14 = vector.load %arg5[%c0_11, %c0_12, %c0_13] : memref<1x1x128xf32, #tpu.memory_space<vmem>>, vector<1x1x128xf32>
    tpu.vector_store %arg5[%c0_11, %c0_12, %c0_13], %13 {strides = array<i32>} : memref<1x1x128xf32, #tpu.memory_space<vmem>>, vector<1x1x128xf32>,
    return
  }
  func.func @transform_0(%arg0: i32) -> (i32, i32) {
    %c0_i32 = arith.constant 0 : i32
    %c0_i32_0 = arith.constant 0 : i32
    return %arg0, %c0_i32 : i32, i32
  }
  func.func @transform_1(%arg0: i32) -> (i32, i32) {
    %c0_i32 = arith.constant 0 : i32
    %c0_i32_0 = arith.constant 0 : i32
    %c0_i32_1 = arith.constant 0 : i32
    return %c0_i32, %c0_i32_0 : i32, i32
  }
  func.func @transform_2(%arg0: i32) -> (i32, i32) {
    %c0_i32 = arith.constant 0 : i32
    %c0_i32_0 = arith.constant 0 : i32
    %c0_i32_1 = arith.constant 0 : i32
    return %c0_i32, %c0_i32_0 : i32, i32
  }
  func.func @transform_3(%arg0: i32) -> (i32, i32) {
    %c0_i32 = arith.constant 0 : i32
    %c0_i32_0 = arith.constant 0 : i32
    %c0_i32_1 = arith.constant 0 : i32
    return %c0_i32, %c0_i32_0 : i32, i32
  }
  func.func @transform_4(%arg0: i32) -> (i32, i32, i32) {
    %c0_i32 = arith.constant 0 : i32
    %c0_i32_0 = arith.constant 0 : i32
    %c0_i32_1 = arith.constant 0 : i32
    return %arg0, %c0_i32, %c0_i32_0 : i32, i32, i32
  }
}

</mosaic_0001>

<bundles_post_ra>
// kernel: tpu_custom_call.1
= control target key start
LH: loop header
LB: loop body
LE: loop exit
PB: predicated region body
PF: predicated region fallthrough
CT: control target
= control target key end

     0   :  { %9 = vsyncpa [#allocation3], 0  ;;  %s2053_s0 = inlined_call_operand.hbm [shape: f32[2048,128], index: 0, kind: input, shape index: {}]   ;;  %s2054_s1 = inlined_call_operand.hbm [shape: f32[128,128], index: 1, kind: input, shape index: {}]   ;;  %s2055_s2 = inlined_call_operand.hbm [shape: f32[128,128], index: 2, kind: input, shape index: {}]   ;;  %s2056_s3 = inlined_call_operand.vmem [shape: f32[1,128], index: 3, kind: input, shape index: {}]   ;;  %s2057_s4 = inlined_call_operand.hbm [shape: f32[2,1,128], index: 4, kind: output, shape index: {}]  }
   0x1   :  { %11 = vsyncpa [#allocation3 + $0x1], 0 }
   0x2   :  { %12 = vsyncpa [#allocation6], 0 }
   0x3   :  { %13 = vsyncpa [#allocation4], 0 }
   0x4   :  { %15 = vsyncpa [#allocation4 + $0x1], 0  ;;  %s1517_s15 = smov 0   ;;  %s1519_s16 = smov 0  }
   0x5   :  { %s1521_s17 = smov 0   ;;  %s1523_s18 = smov 0  }
   0x6 LB: > { %s1538_s19 = sadd.s32 4294967295, %s1486_s18   ;;  %s1194_s20 = sadd.s32 4294967294, %s1486_s18   ;;  %s1486_s18 = sphi %s1523_s18, %s2091_s18   ;;  %s1482_s17 = sphi %s1521_s17, %s2090_s17   ;;  %s1478_s16 = sphi %s1519_s16, %s2089_s16   ;;  %s1474_s15 = sphi %s1517_s15, %s2088_s15  }
   0x7   : > { %p41_p0 = scmp.ne.s32.totalorder %s1478_s16, %s1474_s15  ;;  %p42_p1 = scmp.eq.s32.totalorder %s1538_s19, 0 }
   0x8   : > { %p128_p2 = scmp.eq.s32.totalorder %s1538_s19, 1  ;;  %p134_p3 = scmp.eq.s32.totalorder %s1194_s20, 1 }
   0x9   : > { %p1547_p4 = por %p42_p1, %p41_p0  ;;  %p1195_p5 = scmp.ge.s32.totalorder %s1486_s18, 1 }
   0xa   : > { %p1552_p6 = por %p134_p3, %p41_p0  ;;  %p141_p7 = scmp.lt.s32.totalorder %s1486_s18, 3 }
   0xb   : > { %s152_s25 = sshll.u32 %s2054_s1, 4  ;;  %s1488_s27 = smov [#allocation5]   ;;  %s153_s25 = int_to_ptr.hbm [resolvable:$true] %s152_s25 }
   0xc   : > { %p1560_p8 = pnand %p1195_p5, %p141_p7  ;;  %s154_s28 = sshll.u32 %s1488_s27, 4  ;;  %s155_s28 = int_to_ptr.vmem [resolvable:$true] %s154_s28 }
   0xd   : > { %s166_s5 = sshll.u32 %s2055_s2, 4  ;;  %s1489_s6 = smov 128   ;;  %s167_s5 = int_to_ptr.hbm [resolvable:$true] %s166_s5 }
   0xe   : > { %p1269_p9 = pneg %p1560_p8  ;;  %s1490_s7 = smov 8  }
   0xf   : > { %s1491_s8 = smov [#allocation7]   ;;  %s1579_s10 = sadd.s32 1, %s1486_s18  }
  0x10   : > { %p1270_p10 = pnand %p1269_p9, %p42_p1  ;;  %s168_s9 = sshll.u32 %s1491_s8, 4  ;;  %s169_s9 = int_to_ptr.vmem [resolvable:$true] %s168_s9 }
  0x11   : > { %s28_s11 = sadd.s32 1, %s1482_s17  ;;  %s25_s12 = ssub.s32 %s1486_s18, %s1579_s10 }
  0x12   : > { %1272 = dma.hbm_to_vmem [thread:$0]  (!%p1270_p10), %s153_s25, 2048, %s155_s28, [#allocation6], %s1489_s6, %s1489_s6, %s1490_s7  }
  0x13   : > { %1275 = dma.hbm_to_vmem [thread:$0]  (!%p1270_p10), %s167_s5, 2048, %s169_s9, [#allocation6], %s1489_s6, %s1489_s6, %s1490_s7  }
  0x14   : > { %p35_p12 = scmp.ne.s32.totalorder %s1482_s17, %s1478_s16  ;;  %p26_p13 = scmp.eq.s32.totalorder %s25_s12, 0 }
  0x15   : > { %p36_p0 = scmp.eq.s32.totalorder %s1486_s18, 0  ;;  %p1286_p5 = scmp.lt.s32.totalorder %s1486_s18, 2 }
  0x16   : > { %p1589_p3 = por %p128_p2, %p35_p12  ;;  %s185_s20 = sand.u32 1, %s1482_s17  }
  0x17   : > { %s1595_s14 = scalar_select %p26_p13, %s1482_s17, %s28_s11  }
  0x18   : > { %p37_p7 = por %p36_p0, %p35_p12  ;;  %s1199_s23 = sshll.u32 %s185_s20, 10 }
  0x19   : > { %s1208_s24 = sshll.u32 %s1486_s18, 10  ;;  %s189_s29 = scalar_lea.vmem [#allocation2], %s1199_s23 }
  0x1a   : > { %s194_s28 = scalar_lea.hbm %s2053_s0, %s1208_s24  ;;  %s197_s30 = sshll.u32 %s189_s29, 4  ;;  %s198_s30 = int_to_ptr.vmem [resolvable:$true] %s197_s30 }
  0x1b   : > { %s195_s5 = sshll.u32 %s194_s28, 4  ;;  %p1602_p2 = pnand %p1286_p5, %p37_p7  ;;  %s196_s5 = int_to_ptr.hbm [resolvable:$true] %s195_s5 }
  0x1c   : > { %s186_s9 = scalar_lea.sflag [#allocation3], %s185_s20  ;;  %s1386_s11 = sshra.s32 %s196_s5, 4  ;;  %s1387_s11 = int_to_ptr.hbm [resolvable:$true] %s1386_s11 }
  0x1d   : > { %s1388_s12 = scalar_lea.hbm %s1387_s11, 1024  ;;  %p1390_p10 = pneg %p1602_p2 }
  0x1e   : > { %p1389_p9 = scmp.ne.s32.totalorder %s1387_s11, %s1388_s12  ;;  %s1393_s25 = scalar_lea.hbm %s2053_s0, 2048 }
  0x1f   : > { %p1394_p0 = scmp.lt.s32.totalorder %s1387_s11, %s2053_s0  ;;  %p1395_p5 = scmp.lt.s32.totalorder %s1393_s25, %s1388_s12 }
  0x20   : > { %p1391_p12 = pnand %p1390_p10, %p1389_p9 }
  0x21   : > { %p1396_p7 = por %p1395_p5, %p1394_p0 }
  0x22   : > { %p1392_p13 = pneg %p1391_p12 }
  0x24   : > { %p1397_p11 = pnand %p1396_p7, %p1392_p13 }
  0x26   : > { %1400 = shalt.err (!%p1397_p11)
}
  0x27   : > { %1279 = dma.hbm_to_vmem [thread:$0]  (!%p1602_p2), %s196_s5, 16384, %s198_s30, %s186_s9, %s1489_s6, %s1489_s6, %s1490_s7  }
  0x28   : > { %209 = sbr.rel (%p1560_p8) target bundleno = 798 (0x31e), region = 36 }
  0x2d   : > { %s1622_s20 = sand.u32 1, %s1478_s16  }
  0x2e   : > { %s1203_s29 = sshll.u32 %s1622_s20, 10  ;;  %s212_s11 = scalar_lea.sflag [#allocation3], %s1622_s20 }
  0x2f   : > { %s1626_s12 = scalar_lea.vmem [#allocation2], %s1203_s29 }
  0x30   : > { %1461 = dma.done.wait (%p1547_p4), %s212_s11, 16384  }
  0x31   : > { %1463 = vsyncadd (%p1547_p4), %s212_s11, 4294950912 }
  0x32   : > { %1465 = dma.done.wait (%p42_p1), [#allocation6], 4096  }
  0x33   : > { %1467 = vsyncadd (%p42_p1), [#allocation6], 4294963200  ;;  %v394_v0 = vld [vmem:[#allocation5 + $0x78] sm:$0xff]  ;;  %v393_v1 = vld [vmem:[#allocation5 + $0x70] sm:$0xff]  ;;  %s1105_s6 = scalar_lea.hbm %s2057_s4, %s1538_s19  ;;  %s249_s5 = scalar_lea.vmem [#allocation8], %s1622_s20 }
  0x34   : > { %395 = vmatpush.msra.mxu0 %v394_v0  ;;  %1209 = vmatpush.msra.mxu1 %v394_v0  ;;  %v392_v2 = vld [vmem:[#allocation5 + $0x68] sm:$0xff]  ;;  %v391_v3 = vld [vmem:[#allocation5 + $0x60] sm:$0xff]  ;;  %v390_v4 = vld [vmem:[#allocation5 + $0x58] sm:$0xff]  ;;  %s1107_s8 = sshll.u32 %s249_s5, 4  ;;  %s1109_s9 = sshll.u32 %s1105_s6, 4  ;;  %s1108_s8 = int_to_ptr.vmem [resolvable:$true] %s1107_s8  ;;  %s1110_s9 = int_to_ptr.hbm [resolvable:$true] %s1109_s9 }
  0x35   : > { %1210 = vmatpush.msra.mxu2 %v394_v0  ;;  %1211 = vmatpush.msra.mxu3 %v394_v0  ;;  %v389_v5 = vld [vmem:[#allocation5 + $0x50] sm:$0xff]  ;;  %v388_v6 = vld [vmem:[#allocation5 + $0x48] sm:$0xff]  ;;  %v387_v7 = vld [vmem:[#allocation5 + $0x40] sm:$0xff]  ;;  %s1097_s24 = scalar_lea.sflag [#allocation4], %s1622_s20  ;;  %s1430_s23 = sshra.s32 %s1110_s9, 4  ;;  %s1431_s23 = int_to_ptr.hbm [resolvable:$true] %s1430_s23 }
  0x36   : > { %396 = vmatpush.msra.mxu0 %v393_v1  ;;  %1212 = vmatpush.msra.mxu1 %v393_v1  ;;  %v386_v8 = vld [vmem:[#allocation5 + $0x38] sm:$0xff]  ;;  %v385_v9 = vld [vmem:[#allocation5 + $0x30] sm:$0xff]  ;;  %v384_v10 = vld [vmem:[#allocation5 + $0x28] sm:$0xff]  ;;  %s1432_s25 = scalar_lea.hbm %s1431_s23, 1  ;;  %s1436_s28 = scalar_lea.hbm %s2057_s4, 2 }
  0x37   : > { %1213 = vmatpush.msra.mxu2 %v393_v1  ;;  %1214 = vmatpush.msra.mxu3 %v393_v1  ;;  %v383_v11 = vld [vmem:[#allocation5 + $0x20] sm:$0xff]  ;;  %v382_v12 = vld [vmem:[#allocation5 + $0x18] sm:$0xff]  ;;  %v381_v13 = vld [vmem:[#allocation5 + $0x10] sm:$0xff]  ;;  %p1433_p1 = scmp.ne.s32.totalorder %s1431_s23, %s1432_s25  ;;  %p1437_p11 = scmp.lt.s32.totalorder %s1431_s23, %s2057_s4 }
  0x38   : > { %397 = vmatpush.msra.mxu0 %v392_v2  ;;  %1215 = vmatpush.msra.mxu1 %v392_v2  ;;  %v380_v14 = vld [vmem:[#allocation5 + $0x8] sm:$0xff]  ;;  %v379_v15 = vld [vmem:[#allocation5] sm:$0xff]  ;;  %v253_v18 = vld [vmem:[%s1626_s12 + $0x10] sm:$0xff]  ;;  %p1438_p2 = scmp.lt.s32.totalorder %s1436_s28, %s1432_s25 }
  0x39   : > { %1216 = vmatpush.msra.mxu2 %v392_v2  ;;  %1217 = vmatpush.msra.mxu3 %v392_v2  ;;  %v251_v16 = vld [vmem:[%s1626_s12] sm:$0xff]  ;;  %v252_v17 = vld [vmem:[%s1626_s12 + $0x8] sm:$0xff]  ;;  %v254_v19 = vld [vmem:[%s1626_s12 + $0x18] sm:$0xff]  ;;  %p1434_p4 = pnand %p1433_p1, %p1589_p3 }
  0x3a   : > { %398 = vmatpush.msra.mxu0 %v391_v3  ;;  %1218 = vmatpush.msra.mxu1 %v391_v3  ;;  %v255_v20 = vld [vmem:[%s1626_s12 + $0x20] sm:$0xff]  ;;  %v256_v21 = vld [vmem:[%s1626_s12 + $0x28] sm:$0xff]  ;;  %v257_v23 = vld [vmem:[%s1626_s12 + $0x30] sm:$0xff]  ;;  %p1439_p9 = por %p1438_p2, %p1437_p11 }
  0x3b   : > { %1219 = vmatpush.msra.mxu2 %v391_v3  ;;  %1220 = vmatpush.msra.mxu3 %v391_v3  ;;  %v283_v22 = vld [vmem:[%s1626_s12 + $0x100] sm:$0xff]  ;;  %v284_v24 = vld [vmem:[%s1626_s12 + $0x108] sm:$0xff]  ;;  %v258_v25 = vld [vmem:[%s1626_s12 + $0x38] sm:$0xff]  ;;  %p1435_p8 = pneg %p1434_p4 }
  0x3c   : > { %399 = vmatpush.msra.mxu0 %v390_v4  ;;  %1221 = vmatpush.msra.mxu1 %v390_v4  ;;  %v285_v26 = vld [vmem:[%s1626_s12 + $0x110] sm:$0xff]  ;;  %v259_v27 = vld [vmem:[%s1626_s12 + $0x40] sm:$0xff]  ;;  %v286_v28 = vld [vmem:[%s1626_s12 + $0x118] sm:$0xff] }
  0x3d   : > { %1222 = vmatpush.msra.mxu2 %v390_v4  ;;  %1223 = vmatpush.msra.mxu3 %v390_v4  ;;  %v260_v29 = vld [vmem:[%s1626_s12 + $0x48] sm:$0xff]  ;;  %v287_v30 = vld [vmem:[%s1626_s12 + $0x120] sm:$0xff]  ;;  %v261_v31 = vld [vmem:[%s1626_s12 + $0x50] sm:$0xff]  ;;  %p1440_p10 = pnand %p1439_p9, %p1435_p8 }
  0x3e   : > { %400 = vmatpush.msra.mxu0 %v389_v5  ;;  %1224 = vmatpush.msra.mxu1 %v389_v5  ;;  %v313_v32 = vld [vmem:[%s1626_s12 + $0x1f0] sm:$0xff]  ;;  %v288_v33 = vld [vmem:[%s1626_s12 + $0x128] sm:$0xff]  ;;  %v262_v34 = vld [vmem:[%s1626_s12 + $0x58] sm:$0xff] }
  0x3f   : > { %1225 = vmatpush.msra.mxu2 %v389_v5  ;;  %1226 = vmatpush.msra.mxu3 %v389_v5  ;;  %v314_v35 = vld [vmem:[%s1626_s12 + $0x1f8] sm:$0xff]  ;;  %v289_v36 = vld [vmem:[%s1626_s12 + $0x130] sm:$0xff]  ;;  %v263_v37 = vld [vmem:[%s1626_s12 + $0x60] sm:$0xff] }
  0x40   : > { %401 = vmatpush.msra.mxu0 %v388_v6  ;;  %1227 = vmatpush.msra.mxu1 %v388_v6  ;;  %v315_v38 = vld [vmem:[%s1626_s12 + $0x200] sm:$0xff]  ;;  %v290_v39 = vld [vmem:[%s1626_s12 + $0x138] sm:$0xff]  ;;  %v264_v40 = vld [vmem:[%s1626_s12 + $0x68] sm:$0xff] }
  0x41   : > { %1228 = vmatpush.msra.mxu2 %v388_v6  ;;  %1229 = vmatpush.msra.mxu3 %v388_v6  ;;  %v316_v41 = vld [vmem:[%s1626_s12 + $0x208] sm:$0xff]  ;;  %v291_v42 = vld [vmem:[%s1626_s12 + $0x140] sm:$0xff]  ;;  %v265_v43 = vld [vmem:[%s1626_s12 + $0x70] sm:$0xff] }
  0x42   : > { %402 = vmatpush.msra.mxu0 %v387_v7  ;;  %1230 = vmatpush.msra.mxu1 %v387_v7  ;;  %v317_v44 = vld [vmem:[%s1626_s12 + $0x210] sm:$0xff]  ;;  %v292_v45 = vld [vmem:[%s1626_s12 + $0x148] sm:$0xff]  ;;  %v266_v46 = vld [vmem:[%s1626_s12 + $0x78] sm:$0xff] }
  0x43   : > { %1231 = vmatpush.msra.mxu2 %v387_v7  ;;  %1232 = vmatpush.msra.mxu3 %v387_v7  ;;  %v318_v47 = vld [vmem:[%s1626_s12 + $0x218] sm:$0xff]  ;;  %v293_v48 = vld [vmem:[%s1626_s12 + $0x150] sm:$0xff]  ;;  %v267_v50 = vld [vmem:[%s1626_s12 + $0x80] sm:$0xff] }
  0x44   : > { %403 = vmatpush.msra.mxu0 %v386_v8  ;;  %1233 = vmatpush.msra.mxu1 %v386_v8  ;;  %v319_v51 = vld [vmem:[%s1626_s12 + $0x220] sm:$0xff]  ;;  %v294_v52 = vld [vmem:[%s1626_s12 + $0x158] sm:$0xff]  ;;  %v268_v54 = vld [vmem:[%s1626_s12 + $0x88] sm:$0xff] }
  0x45   : > { %1234 = vmatpush.msra.mxu2 %v386_v8  ;;  %1235 = vmatpush.msra.mxu3 %v386_v8  ;;  %v320_v55 = vld [vmem:[%s1626_s12 + $0x228] sm:$0xff]  ;;  %v295_v56 = vld [vmem:[%s1626_s12 + $0x160] sm:$0xff]  ;;  %v269_v58 = vld [vmem:[%s1626_s12 + $0x90] sm:$0xff] }
  0x46   : > { %404 = vmatpush.msra.mxu0 %v385_v9  ;;  %1236 = vmatpush.msra.mxu1 %v385_v9  ;;  %v321_v59 = vld [vmem:[%s1626_s12 + $0x230] sm:$0xff]  ;;  %v346_v60 = vld [vmem:[%s1626_s12 + $0x2f8] sm:$0xff]  ;;  %v296_v61 = vld [vmem:[%s1626_s12 + $0x168] sm:$0xff] }
  0x47   : > { %1237 = vmatpush.msra.mxu2 %v385_v9  ;;  %1238 = vmatpush.msra.mxu3 %v385_v9  ;;  %v270_v63 = vld [vmem:[%s1626_s12 + $0x98] sm:$0xff]  ;;  %v347_v1 = vld [vmem:[%s1626_s12 + $0x300] sm:$0xff]  ;;  %v297_v2 = vld [vmem:[%s1626_s12 + $0x170] sm:$0xff] }
  0x48   : > { %405 = vmatpush.msra.mxu0 %v384_v10  ;;  %1239 = vmatpush.msra.mxu1 %v384_v10  ;;  %v322_v0 = vld [vmem:[%s1626_s12 + $0x238] sm:$0xff]  ;;  %v271_v4 = vld [vmem:[%s1626_s12 + $0xa0] sm:$0xff]  ;;  %v348_v6 = vld [vmem:[%s1626_s12 + $0x308] sm:$0xff] }
  0x49   : > { %1240 = vmatpush.msra.mxu2 %v384_v10  ;;  %1241 = vmatpush.msra.mxu3 %v384_v10  ;;  %v323_v5 = vld [vmem:[%s1626_s12 + $0x240] sm:$0xff]  ;;  %v298_v7 = vld [vmem:[%s1626_s12 + $0x178] sm:$0xff]  ;;  %v272_v9 = vld [vmem:[%s1626_s12 + $0xa8] sm:$0xff] }
  0x4a   : > { %406 = vmatpush.msra.mxu0 %v383_v11  ;;  %1242 = vmatpush.msra.mxu1 %v383_v11  ;;  %v324_v10 = vld [vmem:[%s1626_s12 + $0x248] sm:$0xff] }
  0x4b   : > { %1243 = vmatpush.msra.mxu2 %v383_v11  ;;  %1244 = vmatpush.msra.mxu3 %v383_v11 }
  0x4c   : > { %407 = vmatpush.msra.mxu0 %v382_v12  ;;  %1245 = vmatpush.msra.mxu1 %v382_v12 }
  0x4d   : > { %1246 = vmatpush.msra.mxu2 %v382_v12  ;;  %1247 = vmatpush.msra.mxu3 %v382_v12  ;;  %v349_v12 = vld [vmem:[%s1626_s12 + $0x310] sm:$0xff] }
  0x4e   : > { %408 = vmatpush.msra.mxu0 %v381_v13  ;;  %1248 = vmatpush.msra.mxu1 %v381_v13 }
  0x4f   : > { %1249 = vmatpush.msra.mxu2 %v381_v13  ;;  %1250 = vmatpush.msra.mxu3 %v381_v13  ;;  %v299_v13 = vld [vmem:[%s1626_s12 + $0x180] sm:$0xff] }
  0x50   : > { %409 = vmatpush.msra.mxu0 %v380_v14  ;;  %1251 = vmatpush.msra.mxu1 %v380_v14 }
  0x51   : > { %1252 = vmatpush.msra.mxu2 %v380_v14  ;;  %1253 = vmatpush.msra.mxu3 %v380_v14 }
  0x52   : > { %410 = vmatpush.msra.mxu0 %v379_v15  ;;  %1254 = vmatpush.msra.mxu1 %v379_v15 }
  0x53   : > { %411 = vmatmul.f32.vlgmr.msra.gmra.mxu0 %v251_v16  ;;  %1255 = vmatpush.msra.mxu2 %v379_v15  ;;  %v325_v16 = vld [vmem:[%s1626_s12 + $0x250] sm:$0xff] }
  0x54   : > { %1256 = vmatpush.msra.mxu3 %v379_v15  ;;  %507 = vmatmul.f32.vlgmr.msra.gmra.mxu1 %v283_v22  ;;  %v273_v15 = vld [vmem:[%s1626_s12 + $0xb0] sm:$0xff]  ;;  %v274_v22 = vld [vmem:[%s1626_s12 + $0xb8] sm:$0xff] }
  0x55   : > { %597 = vmatmul.f32.vlgmr.msra.gmra.mxu2 %v313_v32  ;;  %696 = vmatmul.f32.vlgmr.msra.gmra.mxu3 %v346_v60  ;;  %v329_v60 = vld [vmem:[%s1626_s12 + $0x270] sm:$0xff] }
  0x5b   : > { %414 = vmatmul.f32.gmra.mxu0 %v252_v17 }
  0x5c   : > { %510 = vmatmul.f32.gmra.mxu1 %v284_v24 }
  0x5d   : > { %600 = vmatmul.f32.gmra.mxu2 %v314_v35  ;;  %699 = vmatmul.f32.gmra.mxu3 %v347_v1 }
  0x63   : > { %417 = vmatmul.f32.gmra.mxu0 %v253_v18  ;;  %v350_v18 = vld [vmem:[%s1626_s12 + $0x318] sm:$0xff] }
  0x64   : > { %513 = vmatmul.f32.gmra.mxu1 %v285_v26 }
  0x65   : > { %603 = vmatmul.f32.gmra.mxu2 %v315_v38  ;;  %702 = vmatmul.f32.gmra.mxu3 %v348_v6 }
  0x6b   : > { %420 = vmatmul.f32.gmra.mxu0 %v254_v19  ;;  %v300_v19 = vld [vmem:[%s1626_s12 + $0x188] sm:$0xff] }
  0x6c   : > { %516 = vmatmul.f32.gmra.mxu1 %v286_v28 }
  0x6d   : > { %606 = vmatmul.f32.gmra.mxu2 %v316_v41  ;;  %705 = vmatmul.f32.gmra.mxu3 %v349_v12 }
  0x73   : > { %423 = vmatmul.f32.gmra.mxu0 %v255_v20 }
  0x74   : > { %519 = vmatmul.f32.gmra.mxu1 %v287_v30  ;;  %v301_v30 = vld [vmem:[%s1626_s12 + $0x190] sm:$0xff] }
  0x75   : > { %609 = vmatmul.f32.gmra.mxu2 %v317_v44  ;;  %708 = vmatmul.f32.gmra.mxu3 %v350_v18  ;;  %v302_v44 = vld [vmem:[%s1626_s12 + $0x198] sm:$0xff] }
  0x7b   : > { %426 = vmatmul.f32.gmra.mxu0 %v256_v21 }
  0x7c   : > { %522 = vmatmul.f32.gmra.mxu1 %v288_v33 }
  0x7d   : > { %612 = vmatmul.f32.gmra.mxu2 %v318_v47 }
  0x83   : > { %429 = vmatmul.f32.gmra.mxu0 %v257_v23 }
  0x84   : > { %525 = vmatmul.f32.gmra.mxu1 %v289_v36  ;;  %v275_v36 = vld [vmem:[%s1626_s12 + $0xc0] sm:$0xff] }
  0x85   : > { %615 = vmatmul.f32.gmra.mxu2 %v319_v51 }
  0x8b   : > { %432 = vmatmul.f32.gmra.mxu0 %v258_v25  ;;  %v326_v25 = vld [vmem:[%s1626_s12 + $0x258] sm:$0xff] }
  0x8c   : > { %528 = vmatmul.f32.gmra.mxu1 %v290_v39  ;;  %v327_v39 = vld [vmem:[%s1626_s12 + $0x260] sm:$0xff] }
  0x8d   : > { %618 = vmatmul.f32.gmra.mxu2 %v320_v55  ;;  %v353_v55 = vld [vmem:[%s1626_s12 + $0x330] sm:$0xff] }
  0x93   : > { %435 = vmatmul.f32.gmra.mxu0 %v259_v27 }
  0x94   : > { %531 = vmatmul.f32.gmra.mxu1 %v291_v42 }
  0x95   : > { %621 = vmatmul.f32.gmra.mxu2 %v321_v59 }
  0x9b   : > { %438 = vmatmul.f32.gmra.mxu0 %v260_v29  ;;  %v351_v29 = vld [vmem:[%s1626_s12 + $0x320] sm:$0xff] }
  0x9c   : > { %534 = vmatmul.f32.gmra.mxu1 %v292_v45  ;;  %711 = vmatmul.f32.gmra.mxu3 %v351_v29  ;;  %v357_v29 = vld [vmem:[%s1626_s12 + $0x350] sm:$0xff] }
  0x9d   : > { %624 = vmatmul.f32.gmra.mxu2 %v322_v0  ;;  %v304_v0 = vld [vmem:[%s1626_s12 + $0x1a8] sm:$0xff] }
  0xa3   : > { %441 = vmatmul.f32.gmra.mxu0 %v261_v31 }
  0xa4   : > { %537 = vmatmul.f32.gmra.mxu1 %v293_v48 }
  0xa5   : > { %627 = vmatmul.f32.gmra.mxu2 %v323_v5  ;;  %v330_v5 = vld [vmem:[%s1626_s12 + $0x278] sm:$0xff] }
  0xab   : > { %444 = vmatmul.f32.gmra.mxu0 %v262_v34 }
  0xac   : > { %540 = vmatmul.f32.gmra.mxu1 %v294_v52  ;;  %v328_v52 = vld [vmem:[%s1626_s12 + $0x268] sm:$0xff] }
  0xad   : > { %630 = vmatmul.f32.gmra.mxu2 %v324_v10 }
  0xb3   : > { %447 = vmatmul.f32.gmra.mxu0 %v263_v37 }
  0xb4   : > { %543 = vmatmul.f32.gmra.mxu1 %v295_v56  ;;  %v303_v56 = vld [vmem:[%s1626_s12 + $0x1a0] sm:$0xff] }
  0xb5   : > { %633 = vmatmul.f32.gmra.mxu2 %v325_v16 }
  0xbb   : > { %450 = vmatmul.f32.gmra.mxu0 %v264_v40 }
  0xbc   : > { %546 = vmatmul.f32.gmra.mxu1 %v296_v61 }
  0xbd   : > { %636 = vmatmul.f32.gmra.mxu2 %v326_v25  ;;  %v332_v25 = vld [vmem:[%s1626_s12 + $0x288] sm:$0xff] }
  0xc3   : > { %453 = vmatmul.f32.gmra.mxu0 %v265_v43  ;;  %v352_v43 = vld [vmem:[%s1626_s12 + $0x328] sm:$0xff] }
  0xc4   : > { %549 = vmatmul.f32.gmra.mxu1 %v297_v2  ;;  %714 = vmatmul.f32.gmra.mxu3 %v352_v43  ;;  %v282_v43 = vld [vmem:[%s1626_s12 + $0xf8] sm:$0xff] }
  0xc5   : > { %639 = vmatmul.f32.gmra.mxu2 %v327_v39  ;;  %v308_v39 = vld [vmem:[%s1626_s12 + $0x1c8] sm:$0xff] }
  0xcb   : > { %456 = vmatmul.f32.gmra.mxu0 %v266_v46 }
  0xcc   : > { %552 = vmatmul.f32.gmra.mxu1 %v298_v7  ;;  %717 = vmatmul.f32.gmra.mxu3 %v353_v55 }
  0xcd   : > { %642 = vmatmul.f32.gmra.mxu2 %v328_v52 }
  0xd0   : > { %v1669_v49 = vpop.f32.mrf.mxu0 }
  0xd1   : > { %v1693_v11 = vpop.f32.mrf.mxu1  ;;  %v796_v23 = vmax.f32 %v1669_v49, 0.0  ;;  %v276_v49 = vld [vmem:[%s1626_s12 + $0xc8] sm:$0xff] }
  0xd3   : > { %459 = vmatmul.f32.gmra.mxu0 %v267_v50 }
  0xd4   : > { %555 = vmatmul.f32.gmra.mxu1 %v299_v13  ;;  %v279_v13 = vld [vmem:[%s1626_s12 + $0xe0] sm:$0xff] }
  0xd5   : > { %645 = vmatmul.f32.gmra.mxu2 %v329_v60 }
  0xd8   : > { %v415_v53 = vpop.f32.mrf.mxu0  ;;  %v1729_v1 = vpop.f32.mrf.mxu2 }
  0xd9   : > { %v1699_v17 = vpop.f32.mrf.mxu1  ;;  %v797_v20 = vmax.f32 %v415_v53, 0.0 }
  0xdb   : > { %462 = vmatmul.f32.gmra.mxu0 %v268_v54  ;;  %v924_v26 = vadd.f32 %v797_v20, %v796_v23  ;;  %v306_v20 = vld [vmem:[%s1626_s12 + $0x1b8] sm:$0xff]  ;;  %v280_v23 = vld [vmem:[%s1626_s12 + $0xe8] sm:$0xff] }
  0xdc   : > { %558 = vmatmul.f32.gmra.mxu1 %v300_v19  ;;  %v356_v19 = vld [vmem:[%s1626_s12 + $0x348] sm:$0xff] }
  0xdd   : > { %648 = vmatmul.f32.gmra.mxu2 %v330_v5 }
  0xe0   : > { %v1677_v57 = vpop.f32.mrf.mxu0  ;;  %v1737_v10 = vpop.f32.mrf.mxu2 }
  0xe1   : > { %v798_v24 = vmax.f32 %v1677_v57, 0.0  ;;  %v1707_v28 = vpop.f32.mrf.mxu1 }
  0xe3   : > { %465 = vmatmul.f32.gmra.mxu0 %v269_v58  ;;  %v925_v31 = vadd.f32 %v924_v26, %v798_v24  ;;  %v277_v58 = vld [vmem:[%s1626_s12 + $0xd0] sm:$0xff] }
  0xe4   : > { %561 = vmatmul.f32.gmra.mxu1 %v301_v30  ;;  %v307_v30 = vld [vmem:[%s1626_s12 + $0x1c0] sm:$0xff] }
  0xe8   : > { %v421_v62 = vpop.f32.mrf.mxu0 }
  0xe9   : > { %v799_v27 = vmax.f32 %v421_v62, 0.0  ;;  %v1713_v42 = vpop.f32.mrf.mxu1 }
  0xeb   : > { %468 = vmatmul.f32.gmra.mxu0 %v270_v63  ;;  %v926_v33 = vadd.f32 %v925_v31, %v799_v27  ;;  %v354_v63 = vld [vmem:[%s1626_s12 + $0x338] sm:$0xff] }
  0xec   : > { %564 = vmatmul.f32.gmra.mxu1 %v302_v44  ;;  %720 = vmatmul.f32.gmra.mxu3 %v354_v63  ;;  %v336_v63 = vld [vmem:[%s1626_s12 + $0x2a8] sm:$0xff] }
  0xf0   : > { %v424_v3 = vpop.f32.mrf.mxu0 }
  0xf1   : > { %v800_v32 = vmax.f32 %v424_v3, 0.0  ;;  %v1719_v54 = vpop.f32.mrf.mxu1  ;;  %v278_v3 = vld [vmem:[%s1626_s12 + $0xd8] sm:$0xff] }
  0xf3   : > { %471 = vmatmul.f32.gmra.mxu0 %v271_v4  ;;  %v927_v37 = vadd.f32 %v926_v33, %v800_v32  ;;  %v281_v33 = vld [vmem:[%s1626_s12 + $0xf0] sm:$0xff] }
  0xf4   : > { %567 = vmatmul.f32.gmra.mxu1 %v303_v56 }
  0xf8   : > { %v427_v8 = vpop.f32.mrf.mxu0 }
  0xf9   : > { %v801_v34 = vmax.f32 %v427_v8, 0.0  ;;  %v1725_v62 = vpop.f32.mrf.mxu1  ;;  %v355_v8 = vld [vmem:[%s1626_s12 + $0x340] sm:$0xff] }
  0xfa   : > { %723 = vmatmul.f32.gmra.mxu3 %v355_v8 }
  0xfb   : > { %474 = vmatmul.f32.gmra.mxu0 %v272_v9  ;;  %v928_v40 = vadd.f32 %v927_v37, %v801_v34  ;;  %v305_v9 = vld [vmem:[%s1626_s12 + $0x1b0] sm:$0xff] }
  0xfc   : > { %570 = vmatmul.f32.gmra.mxu1 %v304_v0 }
 0x100   : > { %v430_v14 = vpop.f32.mrf.mxu0 }
 0x101   : > { %v802_v38 = vmax.f32 %v430_v14, 0.0  ;;  %v1733_v7 = vpop.f32.mrf.mxu1 }
 0x102   : > { %726 = vmatmul.f32.gmra.mxu3 %v356_v19 }
 0x103   : > { %477 = vmatmul.f32.gmra.mxu0 %v273_v15  ;;  %v929_v45 = vadd.f32 %v928_v40, %v802_v38  ;;  %v331_v15 = vld [vmem:[%s1626_s12 + $0x280] sm:$0xff]  ;;  %v358_v38 = vld [vmem:[%s1626_s12 + $0x358] sm:$0xff] }
 0x104   : > { %573 = vmatmul.f32.gmra.mxu1 %v305_v9  ;;  %651 = vmatmul.f32.gmra.mxu2 %v331_v15  ;;  %v337_v9 = vld [vmem:[%s1626_s12 + $0x2b0] sm:$0xff]  ;;  %v312_v15 = vld [vmem:[%s1626_s12 + $0x1e8] sm:$0xff] }
 0x108   : > { %v433_v21 = vpop.f32.mrf.mxu0 }
 0x109   : > { %v803_v41 = vmax.f32 %v433_v21, 0.0  ;;  %v1741_v18 = vpop.f32.mrf.mxu1  ;;  %v1745_v21 = vpop.f32.mrf.mxu2 }
 0x10a   : > { %729 = vmatmul.f32.gmra.mxu3 %v357_v29 }
 0x10b   : > { %480 = vmatmul.f32.gmra.mxu0 %v274_v22  ;;  %v930_v47 = vadd.f32 %v929_v45, %v803_v41  ;;  %v334_v45 = vld [vmem:[%s1626_s12 + $0x298] sm:$0xff] }
 0x10c   : > { %576 = vmatmul.f32.gmra.mxu1 %v306_v20  ;;  %654 = vmatmul.f32.gmra.mxu2 %v332_v25  ;;  %v1792_v20 = vpop.f32.mrf.mxu3 }
 0x10d   : > { %2063 = vst [vmem:[#allocation12_spill] sm:$0xff] %v1792_v20 }
 0x110   : > { %v436_v35 = vpop.f32.mrf.mxu0 }
 0x111   : > { %v804_v46 = vmax.f32 %v436_v35, 0.0  ;;  %v1749_v27 = vpop.f32.mrf.mxu1  ;;  %v1753_v31 = vpop.f32.mrf.mxu2  ;;  %v333_v35 = vld [vmem:[%s1626_s12 + $0x290] sm:$0xff] }
 0x112   : > { %732 = vmatmul.f32.gmra.mxu3 %v358_v38  ;;  %v364_v38 = vld [vmem:[%s1626_s12 + $0x388] sm:$0xff] }
 0x113   : > { %483 = vmatmul.f32.gmra.mxu0 %v275_v36  ;;  %v931_v50 = vadd.f32 %v930_v47, %v804_v46 }
 0x114   : > { %579 = vmatmul.f32.gmra.mxu1 %v307_v30  ;;  %657 = vmatmul.f32.gmra.mxu2 %v333_v35 }
 0x118   : > { %v439_v48 = vpop.f32.mrf.mxu0 }
 0x119   : > { %v805_v51 = vmax.f32 %v439_v48, 0.0  ;;  %v1757_v37 = vpop.f32.mrf.mxu1  ;;  %v1761_v40 = vpop.f32.mrf.mxu2  ;;  %v359_v48 = vld [vmem:[%s1626_s12 + $0x360] sm:$0xff] }
 0x11a   : > { %735 = vmatmul.f32.gmra.mxu3 %v359_v48 }
 0x11b   : > { %v932_v53 = vadd.f32 %v931_v50, %v805_v51  ;;  %486 = vmatmul.f32.gmra.mxu0 %v276_v49  ;;  %v309_v49 = vld [vmem:[%s1626_s12 + $0x1d0] sm:$0xff] }
 0x11c   : > { %582 = vmatmul.f32.gmra.mxu1 %v308_v39  ;;  %660 = vmatmul.f32.gmra.mxu2 %v334_v45  ;;  %v365_v45 = vld [vmem:[%s1626_s12 + $0x390] sm:$0xff] }
 0x120   : > { %v442_v57 = vpop.f32.mrf.mxu0 }
 0x121   : > { %v806_v59 = vmax.f32 %v442_v57, 0.0  ;;  %v1765_v47 = vpop.f32.mrf.mxu1  ;;  %v1769_v50 = vpop.f32.mrf.mxu2  ;;  %v360_v57 = vld [vmem:[%s1626_s12 + $0x368] sm:$0xff] }
 0x122   : > { %738 = vmatmul.f32.gmra.mxu3 %v360_v57 }
 0x123   : > { %v933_v61 = vadd.f32 %v932_v53, %v806_v59  ;;  %489 = vmatmul.f32.gmra.mxu0 %v277_v58  ;;  %v335_v53 = vld [vmem:[%s1626_s12 + $0x2a0] sm:$0xff]  ;;  %v310_v58 = vld [vmem:[%s1626_s12 + $0x1d8] sm:$0xff] }
 0x124   : > { %585 = vmatmul.f32.gmra.mxu1 %v309_v49  ;;  %663 = vmatmul.f32.gmra.mxu2 %v335_v53  ;;  %v366_v53 = vld [vmem:[%s1626_s12 + $0x398] sm:$0xff] }
 0x128   : > { %v445_v2 = vpop.f32.mrf.mxu0 }
 0x129   : > { %v807_v4 = vmax.f32 %v445_v2, 0.0  ;;  %v1772_v56 = vpop.f32.mrf.mxu1  ;;  %v1776_v59 = vpop.f32.mrf.mxu2 }
 0x12b   : > { %v934_v6 = vadd.f32 %v933_v61, %v807_v4  ;;  %492 = vmatmul.f32.gmra.mxu0 %v278_v3  ;;  %v361_v3 = vld [vmem:[%s1626_s12 + $0x370] sm:$0xff]  ;;  %v311_v4 = vld [vmem:[%s1626_s12 + $0x1e0] sm:$0xff] }
 0x12c   : > { %588 = vmatmul.f32.gmra.mxu1 %v310_v58  ;;  %666 = vmatmul.f32.gmra.mxu2 %v336_v63  ;;  %v1073_v63 = vld [vmem:[#allocation7 + $0x78] sm:$0xff] }
 0x12d   : > { %741 = vmatmul.f32.gmra.mxu3 %v361_v3  ;;  %1075 = vmatpush.msrb.mxu1 %v1073_v63  ;;  %v371_v63 = vld [vmem:[%s1626_s12 + $0x3c0] sm:$0xff] }
 0x130   : > { %v448_v12 = vpop.f32.mrf.mxu0 }
 0x131   : > { %v808_v14 = vmax.f32 %v448_v12, 0.0  ;;  %v1779_v2 = vpop.f32.mrf.mxu1  ;;  %v1783_v5 = vpop.f32.mrf.mxu2 }
 0x133   : > { %v935_v16 = vadd.f32 %v934_v6, %v808_v14  ;;  %495 = vmatmul.f32.gmra.mxu0 %v279_v13  ;;  %v362_v14 = vld [vmem:[%s1626_s12 + $0x378] sm:$0xff] }
 0x134   : > { %591 = vmatmul.f32.gmra.mxu1 %v311_v4  ;;  %669 = vmatmul.f32.gmra.mxu2 %v337_v9  ;;  %v343_v9 = vld [vmem:[%s1626_s12 + $0x2e0] sm:$0xff] }
 0x135   : > { %744 = vmatmul.f32.gmra.mxu3 %v362_v14 }
 0x138   : > { %v451_v22 = vpop.f32.mrf.mxu0 }
 0x139   : > { %v809_v24 = vmax.f32 %v451_v22, 0.0  ;;  %v1786_v13 = vpop.f32.mrf.mxu1 }
 0x13b   : > { %v936_v26 = vadd.f32 %v935_v16, %v809_v24  ;;  %498 = vmatmul.f32.gmra.mxu0 %v280_v23  ;;  %v1790_v16 = vpop.f32.mrf.mxu2  ;;  %v338_v23 = vld [vmem:[%s1626_s12 + $0x2b8] sm:$0xff] }
 0x13c   : > { %594 = vmatmul.f32.gmra.mxu1 %v312_v15  ;;  %672 = vmatmul.f32.gmra.mxu2 %v338_v23 }
 0x140   : > { %v454_v32 = vpop.f32.mrf.mxu0 }
 0x141   : > { %v810_v34 = vmax.f32 %v454_v32, 0.0  ;;  %v1795_v25 = vpop.f32.mrf.mxu1  ;;  %v1800_v32 = vpop.f32.mrf.mxu3 }
 0x142   : > { %2064 = vst [vmem:[#allocation13_spill] sm:$0xff] %v1800_v32 }
 0x143   : > { %v937_v36 = vadd.f32 %v936_v26, %v810_v34  ;;  %501 = vmatmul.f32.gmra.mxu0 %v281_v33  ;;  %v363_v26 = vld [vmem:[%s1626_s12 + $0x380] sm:$0xff]  ;;  %v1798_v29 = vpop.f32.mrf.mxu2 }
 0x144   : > { %747 = vmatmul.f32.gmra.mxu3 %v363_v26  ;;  %v339_v34 = vld [vmem:[%s1626_s12 + $0x2c0] sm:$0xff]  ;;  %v369_v26 = vld [vmem:[%s1626_s12 + $0x3b0] sm:$0xff] }
 0x145   : > { %675 = vmatmul.f32.gmra.mxu2 %v339_v34 }
 0x148   : > { %v457_v41 = vpop.f32.mrf.mxu0 }
 0x149   : > { %v811_v44 = vmax.f32 %v457_v41, 0.0 }
 0x14b   : > { %v938_v46 = vadd.f32 %v937_v36, %v811_v44  ;;  %504 = vmatmul.f32.gmra.mxu0 %v282_v43  ;;  %v1805_v36 = vpop.f32.mrf.mxu1  ;;  %v1808_v39 = vpop.f32.mrf.mxu2  ;;  %v340_v44 = vld [vmem:[%s1626_s12 + $0x2c8] sm:$0xff] }
 0x14c   : > { %750 = vmatmul.f32.gmra.mxu3 %v364_v38  ;;  %v1812_v43 = vpop.f32.mrf.mxu3  ;;  %v345_v38 = vld [vmem:[%s1626_s12 + $0x2f0] sm:$0xff] }
 0x14d   : > { %2065 = vst [vmem:[#allocation14_spill] sm:$0xff] %v1812_v43  ;;  %678 = vmatmul.f32.gmra.mxu2 %v340_v44  ;;  %v370_v44 = vld [vmem:[%s1626_s12 + $0x3b8] sm:$0xff] }
 0x150   : > { %v460_v51 = vpop.f32.mrf.mxu0 }
 0x151   : > { %v812_v52 = vmax.f32 %v460_v51, 0.0 }
 0x153   : > { %v939_v55 = vadd.f32 %v938_v46, %v812_v52  ;;  %v1816_v46 = vpop.f32.mrf.mxu1  ;;  %v1818_v48 = vpop.f32.mrf.mxu2  ;;  %v341_v52 = vld [vmem:[%s1626_s12 + $0x2d0] sm:$0xff] }
 0x154   : > { %753 = vmatmul.f32.gmra.mxu3 %v365_v45  ;;  %v1820_v51 = vpop.f32.mrf.mxu3 }
 0x155   : > { %2066 = vst [vmem:[#allocation15_spill] sm:$0xff] %v1820_v51  ;;  %681 = vmatmul.f32.gmra.mxu2 %v341_v52 }
 0x158   : > { %v463_v60 = vpop.f32.mrf.mxu0 }
 0x159   : > { %v813_v61 = vmax.f32 %v463_v60, 0.0 }
 0x15b   : > { %v940_v0 = vadd.f32 %v939_v55, %v813_v61  ;;  %v1824_v55 = vpop.f32.mrf.mxu2  ;;  %v1826_v57 = vpop.f32.mrf.mxu1  ;;  %v342_v61 = vld [vmem:[%s1626_s12 + $0x2d8] sm:$0xff] }
 0x15c   : > { %756 = vmatmul.f32.gmra.mxu3 %v366_v53  ;;  %v1828_v60 = vpop.f32.mrf.mxu3 }
 0x15d   : > { %2067 = vst [vmem:[#allocation16_spill] sm:$0xff] %v1828_v60  ;;  %684 = vmatmul.f32.gmra.mxu2 %v342_v61 }
 0x160   : > { %v466_v6 = vpop.f32.mrf.mxu0 }
 0x161   : > { %v814_v8 = vmax.f32 %v466_v6, 0.0 }
 0x163   : > { %v941_v12 = vadd.f32 %v940_v0, %v814_v8  ;;  %v367_v0 = vld [vmem:[%s1626_s12 + $0x3a0] sm:$0xff]  ;;  %v1832_v3 = vpop.f32.mrf.mxu2  ;;  %v1836_v8 = vpop.f32.mrf.mxu1 }
 0x164   : > { %759 = vmatmul.f32.gmra.mxu3 %v367_v0  ;;  %v1834_v6 = vpop.f32.mrf.mxu3 }
 0x165   : > { %2068 = vst [vmem:[#allocation17_spill] sm:$0xff] %v1834_v6  ;;  %687 = vmatmul.f32.gmra.mxu2 %v343_v9 }
 0x168   : > { %v469_v19 = vpop.f32.mrf.mxu0 }
 0x169   : > { %v815_v22 = vmax.f32 %v469_v19, 0.0 }
 0x16b   : > { %v942_v24 = vadd.f32 %v941_v12, %v815_v22  ;;  %v368_v12 = vld [vmem:[%s1626_s12 + $0x3a8] sm:$0xff]  ;;  %v1840_v14 = vpop.f32.mrf.mxu2  ;;  %v1845_v23 = vpop.f32.mrf.mxu1 }
 0x16c   : > { %762 = vmatmul.f32.gmra.mxu3 %v368_v12  ;;  %v1842_v19 = vpop.f32.mrf.mxu3  ;;  %v344_v22 = vld [vmem:[%s1626_s12 + $0x2e8] sm:$0xff] }
 0x16d   : > { %2069 = vst [vmem:[#allocation18_spill] sm:$0xff] %v1842_v19  ;;  %690 = vmatmul.f32.gmra.mxu2 %v344_v22 }
 0x170   : > { %v472_v30 = vpop.f32.mrf.mxu0 }
 0x171   : > { %v816_v33 = vmax.f32 %v472_v30, 0.0 }
 0x173   : > { %v1803_v35 = vadd.f32 %v942_v24, %v816_v33  ;;  %v1072_v24 = vld [vmem:[#allocation7 + $0x70] sm:$0xff]  ;;  %v1848_v30 = vpop.f32.mrf.mxu2  ;;  %v1854_v45 = vpop.f32.mrf.mxu1 }
 0x174   : > { %1076 = vmatpush.msrb.mxu1 %v1072_v24  ;;  %765 = vmatmul.f32.gmra.mxu3 %v369_v26  ;;  %v1850_v34 = vpop.f32.mrf.mxu3  ;;  %v372_v26 = vld [vmem:[%s1626_s12 + $0x3c8] sm:$0xff] }
 0x175   : > { %2070 = vst [vmem:[#allocation19_spill] sm:$0xff] %v1850_v34  ;;  %693 = vmatmul.f32.gmra.mxu2 %v345_v38 }
 0x178   : > { %v1810_v41 = vpop.f32.mrf.mxu0 }
 0x179   : > { %v817_v24 = vmax.f32 %v1810_v41, 0.0 }
 0x17b   : > { %v1856_v52 = vpop.f32.mrf.mxu2  ;;  %v1863_v9 = vpop.f32.mrf.mxu1  ;;  %v944_v34 = vadd.f32 %v1803_v35, %v817_v24 }
 0x17c   : > { %768 = vmatmul.f32.gmra.mxu3 %v370_v44  ;;  %v1858_v61 = vpop.f32.mrf.mxu3 }
 0x17d   : > { %2071 = vst [vmem:[#allocation20_spill] sm:$0xff] %v1858_v61 }
 0x180   : > { %v478_v49 = vpop.f32.mrf.mxu0 }
 0x181   : > { %v818_v38 = vmax.f32 %v478_v49, 0.0 }
 0x183   : > { %v1861_v0 = vpop.f32.mrf.mxu2  ;;  %v945_v6 = vadd.f32 %v944_v34, %v818_v38  ;;  %v1874_v51 = vpop.f32.mrf.mxu1  ;;  %v1071_v34 = vld [vmem:[#allocation7 + $0x68] sm:$0xff] }
 0x184   : > { %771 = vmatmul.f32.gmra.mxu3 %v371_v63  ;;  %v1865_v22 = vpop.f32.mrf.mxu3  ;;  %1077 = vmatpush.msrb.mxu1 %v1071_v34 }
 0x185   : > { %2072 = vst [vmem:[#allocation21_spill] sm:$0xff] %v1865_v22  ;;  %v373_v22 = vld [vmem:[%s1626_s12 + $0x3d0] sm:$0xff] }
 0x188   : > { %v481_v58 = vpop.f32.mrf.mxu0 }
 0x189   : > { %v819_v61 = vmax.f32 %v481_v58, 0.0 }
 0x18b   : > { %v1869_v44 = vpop.f32.mrf.mxu2  ;;  %v946_v43 = vadd.f32 %v945_v6, %v819_v61  ;;  %v374_v61 = vld [vmem:[%s1626_s12 + $0x3d8] sm:$0xff] }
 0x18c   : > { %774 = vmatmul.f32.gmra.mxu3 %v372_v26  ;;  %2073 = vst [vmem:[#allocation22_spill] sm:$0xff] %v1869_v44  ;;  %v1872_v63 = vpop.f32.mrf.mxu3 }
 0x18d   : > { %2074 = vst [vmem:[#allocation23_spill] sm:$0xff] %v1872_v63 }
 0x190   : > { %v484_v4 = vpop.f32.mrf.mxu0 }
 0x191   : > { %v820_v60 = vmax.f32 %v484_v4, 0.0 }
 0x193   : > { %v947_v41 = vadd.f32 %v946_v43, %v820_v60  ;;  %v1877_v44 = vpop.f32.mrf.mxu2 }
 0x194   : > { %777 = vmatmul.f32.gmra.mxu3 %v373_v22  ;;  %v1879_v58 = vpop.f32.mrf.mxu3 }
 0x198   : > { %v487_v15 = vpop.f32.mrf.mxu0 }
 0x199   : > { %v821_v32 = vmax.f32 %v487_v15, 0.0  ;;  %v1881_v15 = vpop.f32.mrf.mxu1 }
 0x19b   : > { %v948_v49 = vadd.f32 %v947_v41, %v821_v32  ;;  %v1886_v41 = vpop.f32.mrf.mxu2 }
 0x19c   : > { %780 = vmatmul.f32.gmra.mxu3 %v374_v61  ;;  %v832_v61 = vmax.f32 %v1719_v54, 0.0  ;;  %v836_v54 = vmax.f32 %v1749_v27, 0.0  ;;  %v839_v27 = vmax.f32 %v1772_v56, 0.0  ;;  %v843_v56 = vmax.f32 %v1805_v36, 0.0 }
 0x19d   : > { %v848_v36 = vmax.f32 %v1854_v45, 0.0 }
 0x1a0   : > { %v490_v33 = vpop.f32.mrf.mxu0 }
 0x1a1   : > { %v822_v20 = vmax.f32 %v490_v33, 0.0 }
 0x1a3   : > { %v949_v24 = vadd.f32 %v948_v49, %v822_v20  ;;  %v828_v20 = vmax.f32 %v1693_v11, 0.0  ;;  %v375_v49 = vld [vmem:[%s1626_s12 + $0x3e0] sm:$0xff]  ;;  %v1898_v11 = vpop.f32.mrf.mxu2 }
 0x1a4   : > { %783 = vmatmul.f32.gmra.mxu3 %v375_v49  ;;  %v1070_v49 = vld [vmem:[#allocation7 + $0x60] sm:$0xff] }
 0x1a5   : > { %1078 = vmatpush.msrb.mxu1 %v1070_v49 }
 0x1a8   : > { %v493_v53 = vpop.f32.mrf.mxu0 }
 0x1a9   : > { %v823_v26 = vmax.f32 %v493_v53, 0.0  ;;  %v1884_v53 = vpop.f32.mrf.mxu3 }
 0x1ab   : > { %v950_v4 = vadd.f32 %v949_v24, %v823_v26 }
 0x1b0   : > { %v496_v12 = vpop.f32.mrf.mxu0 }
 0x1b1   : > { %v824_v63 = vmax.f32 %v496_v12, 0.0  ;;  %v1894_v34 = vpop.f32.mrf.mxu3 }
 0x1b3   : > { %v951_v43 = vadd.f32 %v950_v4, %v824_v63  ;;  %v1891_v63 = vpop.f32.mrf.mxu1  ;;  %v831_v4 = vmax.f32 %v1713_v42, 0.0  ;;  %v835_v42 = vmax.f32 %v1741_v18, 0.0 }
 0x1b8   : > { %v499_v19 = vpop.f32.mrf.mxu0 }
 0x1b9   : > { %v825_v6 = vmax.f32 %v499_v19, 0.0  ;;  %v829_v19 = vmax.f32 %v1699_v17, 0.0  ;;  %v833_v17 = vmax.f32 %v1725_v62, 0.0 }
 0x1bb   : > { %v952_v32 = vadd.f32 %v951_v43, %v825_v6 }
 0x1c0   : > { %v502_v35 = vpop.f32.mrf.mxu0 }
 0x1c1   : > { %v826_v60 = vmax.f32 %v502_v35, 0.0  ;;  %v830_v35 = vmax.f32 %v1707_v28, 0.0 }
 0x1c3   : > { %v953_v22 = vadd.f32 %v952_v32, %v826_v60  ;;  %v376_v60 = vld [vmem:[%s1626_s12 + $0x3e8] sm:$0xff] }
 0x1c4   : > { %786 = vmatmul.f32.gmra.mxu3 %v376_v60 }
 0x1c8   : > { %v505_v33 = vpop.f32.mrf.mxu0 }
 0x1c9   : > { %v827_v38 = vmax.f32 %v505_v33, 0.0  ;;  %v834_v33 = vmax.f32 %v1733_v7, 0.0  ;;  %v838_v7 = vmax.f32 %v1765_v47, 0.0  ;;  %v842_v47 = vmax.f32 %v1795_v25, 0.0 }
 0x1ca   : > { %v847_v25 = vmax.f32 %v1845_v23, 0.0  ;;  %v852_v23 = vmax.f32 %v1891_v63, 0.0  ;;  %v858_v63 = vmax.f32 %v1729_v1, 0.0 }
 0x1cb   : > { %v954_v12 = vadd.f32 %v953_v22, %v827_v38  ;;  %v583_v22 = vpop.f32.mrf.mxu1  ;;  %v1903_v38 = vpop.f32.mrf.mxu3 }
 0x1cc   : > { %v853_v45 = vmax.f32 %v583_v22, 0.0  ;;  %v859_v22 = vmax.f32 %v1737_v10, 0.0 }
 0x1cd   : > { %v955_v26 = vadd.f32 %v954_v12, %v828_v20 }
 0x1cf   : > { %v956_v24 = vadd.f32 %v955_v26, %v829_v19  ;;  %v377_v19 = vld [vmem:[%s1626_s12 + $0x3f0] sm:$0xff]  ;;  %v837_v26 = vmax.f32 %v1757_v37, 0.0 }
 0x1d0   : > { %789 = vmatmul.f32.gmra.mxu3 %v377_v19  ;;  %v1068_v37 = vld [vmem:[#allocation7 + $0x50] sm:$0xff]  ;;  %v845_v19 = vmax.f32 %v1826_v57, 0.0  ;;  %v850_v57 = vmax.f32 %v1874_v51, 0.0 }
 0x1d1   : > { %v957_v6 = vadd.f32 %v956_v24, %v830_v35  ;;  %v1909_v35 = vpop.f32.mrf.mxu2 }
 0x1d3   : > { %v958_v43 = vadd.f32 %v957_v6, %v831_v4  ;;  %v1069_v4 = vld [vmem:[#allocation7 + $0x58] sm:$0xff]  ;;  %v1912_v18 = vpop.f32.mrf.mxu3 }
 0x1d4   : > { %1079 = vmatpush.msrb.mxu1 %v1069_v4 }
 0x1d5   : > { %v959_v32 = vadd.f32 %v958_v43, %v832_v61  ;;  %v586_v61 = vpop.f32.mrf.mxu1  ;;  %v840_v43 = vmax.f32 %v1779_v2, 0.0  ;;  %v844_v2 = vmax.f32 %v1816_v46, 0.0  ;;  %v849_v46 = vmax.f32 %v1863_v9, 0.0  ;;  %v1067_v9 = vld [vmem:[#allocation7 + $0x48] sm:$0xff] }
 0x1d6   : > { %1080 = vmatpush.msrb.mxu1 %v1068_v37 }
 0x1d7   : > { %v960_v28 = vadd.f32 %v959_v32, %v833_v17  ;;  %v378_v17 = vld [vmem:[%s1626_s12 + $0x3f8] sm:$0xff]  ;;  %v841_v32 = vmax.f32 %v1786_v13, 0.0  ;;  %v846_v13 = vmax.f32 %v1836_v8, 0.0 }
 0x1d8   : > { %792 = vmatmul.f32.gmra.mxu3 %v378_v17  ;;  %v851_v17 = vmax.f32 %v1881_v15, 0.0  ;;  %1081 = vmatpush.msrb.mxu1 %v1067_v9 }
 0x1d9   : > { %v961_v20 = vadd.f32 %v960_v28, %v834_v33 }
 0x1db   : > { %v962_v12 = vadd.f32 %v961_v20, %v835_v42  ;;  %v1919_v42 = vpop.f32.mrf.mxu2  ;;  %v1921_v20 = vpop.f32.mrf.mxu3 }
 0x1dd   : > { %v963_v62 = vadd.f32 %v962_v12, %v836_v54  ;;  %v589_v49 = vpop.f32.mrf.mxu1 }
 0x1de   : > { %v855_v51 = vmax.f32 %v589_v49, 0.0  ;;  %v861_v49 = vmax.f32 %v1753_v31, 0.0 }
 0x1df   : > { %v964_v24 = vadd.f32 %v963_v62, %v837_v26 }
 0x1e1   : > { %v965_v6 = vadd.f32 %v964_v24, %v838_v7 }
 0x1e3   : > { %v966_v60 = vadd.f32 %v965_v6, %v839_v27  ;;  %v1927_v7 = vpop.f32.mrf.mxu3  ;;  %v1930_v4 = vpop.f32.mrf.mxu2 }
 0x1e5   : > { %v967_v33 = vadd.f32 %v966_v60, %v840_v43  ;;  %v592_v43 = vpop.f32.mrf.mxu1 }
 0x1e7   : > { %v968_v28 = vadd.f32 %v967_v33, %v841_v32 }
 0x1e9   : > { %v969_v54 = vadd.f32 %v968_v28, %v842_v47 }
 0x1eb   : > { %v970_v12 = vadd.f32 %v969_v54, %v843_v56  ;;  %v1935_v37 = vpop.f32.mrf.mxu3  ;;  %v1939_v33 = vpop.f32.mrf.mxu2  ;;  %v854_v56 = vmax.f32 %v586_v61, 0.0  ;;  %v860_v61 = vmax.f32 %v1745_v21, 0.0 }
 0x1ed   : > { %v971_v26 = vadd.f32 %v970_v12, %v844_v2  ;;  %v595_v54 = vpop.f32.mrf.mxu1 }
 0x1ef   : > { %v972_v62 = vadd.f32 %v971_v26, %v845_v19  ;;  %v856_v26 = vmax.f32 %v592_v43, 0.0 }
 0x1f1   : > { %v973_v24 = vadd.f32 %v972_v62, %v846_v13  ;;  %v857_v13 = vmax.f32 %v595_v54, 0.0 }
 0x1f3   : > { %v974_v27 = vadd.f32 %v973_v24, %v847_v25  ;;  %v1941_v12 = vpop.f32.mrf.mxu3  ;;  %v1943_v62 = vpop.f32.mrf.mxu2 }
 0x1f5   : > { %v975_v6 = vadd.f32 %v974_v27, %v848_v36 }
 0x1f7   : > { %v976_v60 = vadd.f32 %v975_v6, %v849_v46  ;;  %v862_v6 = vmax.f32 %v1761_v40, 0.0 }
 0x1f9   : > { %v977_v8 = vadd.f32 %v976_v60, %v850_v57  ;;  %v863_v60 = vmax.f32 %v1769_v50, 0.0  ;;  %v1066_v50 = vld [vmem:[#allocation7 + $0x40] sm:$0xff] }
 0x1fa   : > { %1082 = vmatpush.msrb.mxu1 %v1066_v50 }
 0x1fb   : > { %v978_v32 = vadd.f32 %v977_v8, %v851_v17  ;;  %v1948_v27 = vpop.f32.mrf.mxu3  ;;  %v1952_v57 = vpop.f32.mrf.mxu2  ;;  %v864_v8 = vmax.f32 %v1776_v59, 0.0  ;;  %v865_v17 = vmax.f32 %v1783_v5, 0.0  ;;  %v869_v59 = vmax.f32 %v1818_v48, 0.0 }
 0x1fc   : > { %v870_v5 = vmax.f32 %v1824_v55, 0.0 }
 0x1fd   : > { %v979_v47 = vadd.f32 %v978_v32, %v852_v23  ;;  %v866_v23 = vmax.f32 %v1790_v16, 0.0  ;;  %v871_v16 = vmax.f32 %v1832_v3, 0.0  ;;  %v2075_v3 = vld [vmem:[#allocation22_spill] sm:$0xff] }
 0x1ff   : > { %v980_v28 = vadd.f32 %v979_v47, %v853_v45  ;;  %v867_v47 = vmax.f32 %v1798_v29, 0.0 }
 0x201   : > { %v981_v2 = vadd.f32 %v980_v28, %v854_v56  ;;  %v868_v28 = vmax.f32 %v1808_v39, 0.0  ;;  %v1064_v39 = vld [vmem:[#allocation7 + $0x30] sm:$0xff] }
 0x203   : > { %v982_v19 = vadd.f32 %v981_v2, %v855_v51  ;;  %v1957_v32 = vpop.f32.mrf.mxu3  ;;  %v682_v45 = vpop.f32.mrf.mxu2  ;;  %v1065_v2 = vld [vmem:[#allocation7 + $0x38] sm:$0xff] }
 0x204   : > { %1083 = vmatpush.msrb.mxu1 %v1065_v2  ;;  %v886_v50 = vmax.f32 %v682_v45, 0.0 }
 0x205   : > { %v983_v15 = vadd.f32 %v982_v19, %v856_v26  ;;  %v872_v19 = vmax.f32 %v1840_v14, 0.0 }
 0x206   : > { %1084 = vmatpush.msrb.mxu1 %v1064_v39  ;;  %v2077_v39 = vld [vmem:[#allocation13_spill] sm:$0xff] }
 0x207   : > { %v984_v25 = vadd.f32 %v983_v15, %v857_v13  ;;  %v873_v15 = vmax.f32 %v1848_v30, 0.0  ;;  %v878_v30 = vmax.f32 %v1886_v41, 0.0 }
 0x209   : > { %v985_v24 = vadd.f32 %v984_v25, %v858_v63  ;;  %v874_v63 = vmax.f32 %v1856_v52, 0.0  ;;  %v1063_v25 = vld [vmem:[#allocation7 + $0x28] sm:$0xff]  ;;  %v879_v52 = vmax.f32 %v1898_v11, 0.0 }
 0x20a   : > { %1085 = vmatpush.msrb.mxu1 %v1063_v25 }
 0x20b   : > { %v986_v36 = vadd.f32 %v985_v24, %v859_v22  ;;  %v1964_v51 = vpop.f32.mrf.mxu3  ;;  %v685_v13 = vpop.f32.mrf.mxu2  ;;  %v875_v22 = vmax.f32 %v1861_v0, 0.0 }
 0x20d   : > { %v987_v46 = vadd.f32 %v986_v36, %v860_v61  ;;  %v876_v36 = vmax.f32 %v2075_v3, 0.0 }
 0x20f   : > { %v988_v43 = vadd.f32 %v987_v46, %v861_v49  ;;  %v877_v49 = vmax.f32 %v1877_v44, 0.0 }
 0x211   : > { %v989_v1 = vadd.f32 %v988_v43, %v862_v6 }
 0x213   : > { %v990_v10 = vadd.f32 %v989_v1, %v863_v60  ;;  %v1971_v61 = vpop.f32.mrf.mxu3  ;;  %v688_v6 = vpop.f32.mrf.mxu2  ;;  %v880_v1 = vmax.f32 %v1909_v35, 0.0 }
 0x215   : > { %v991_v21 = vadd.f32 %v990_v10, %v864_v8  ;;  %v881_v10 = vmax.f32 %v1919_v42, 0.0  ;;  %v887_v42 = vmax.f32 %v685_v13, 0.0 }
 0x217   : > { %v992_v31 = vadd.f32 %v991_v21, %v865_v17  ;;  %v882_v21 = vmax.f32 %v1930_v4, 0.0  ;;  %v888_v4 = vmax.f32 %v688_v6, 0.0  ;;  %v2082_v6 = vld [vmem:[#allocation18_spill] sm:$0xff] }
 0x219   : > { %v993_v40 = vadd.f32 %v992_v31, %v866_v23 }
 0x21b   : > { %v994_v56 = vadd.f32 %v993_v40, %v867_v47  ;;  %v1978_v0 = vpop.f32.mrf.mxu3  ;;  %v691_v44 = vpop.f32.mrf.mxu2  ;;  %v883_v47 = vmax.f32 %v1939_v33, 0.0  ;;  %v884_v40 = vmax.f32 %v1943_v62, 0.0 }
 0x21c   : > { %v889_v2 = vmax.f32 %v691_v44, 0.0 }
 0x21d   : > { %v995_v9 = vadd.f32 %v994_v56, %v868_v28  ;;  %v885_v28 = vmax.f32 %v1952_v57, 0.0  ;;  %v892_v57 = vmax.f32 %v2077_v39, 0.0 }
 0x21f   : > { %v996_v54 = vadd.f32 %v995_v9, %v869_v59 }
 0x221   : > { %v997_v29 = vadd.f32 %v996_v54, %v870_v5 }
 0x223   : > { %v998_v26 = vadd.f32 %v997_v29, %v871_v16  ;;  %v1985_v35 = vpop.f32.mrf.mxu3  ;;  %v694_v9 = vpop.f32.mrf.mxu2 }
 0x224   : > { %v890_v16 = vmax.f32 %v694_v9, 0.0  ;;  %v904_v9 = vmax.f32 %v1894_v34, 0.0  ;;  %v909_v34 = vmax.f32 %v1935_v37, 0.0  ;;  %v915_v37 = vmax.f32 %v1978_v0, 0.0 }
 0x225   : > { %v999_v48 = vadd.f32 %v998_v26, %v872_v19  ;;  %v2076_v19 = vld [vmem:[#allocation12_spill] sm:$0xff] }
 0x226   : > { %v891_v62 = vmax.f32 %v2076_v19, 0.0 }
 0x227   : > { %v1000_v55 = vadd.f32 %v999_v48, %v873_v15  ;;  %v2078_v48 = vld [vmem:[#allocation14_spill] sm:$0xff] }
 0x229   : > { %v1001_v24 = vadd.f32 %v1000_v55, %v874_v63  ;;  %v893_v63 = vmax.f32 %v2078_v48, 0.0  ;;  %v2079_v55 = vld [vmem:[#allocation15_spill] sm:$0xff] }
 0x22a   : > { %v894_v13 = vmax.f32 %v2079_v55, 0.0 }
 0x22b   : > { %v1002_v14 = vadd.f32 %v1001_v24, %v875_v22  ;;  %v1987_v33 = vpop.f32.mrf.mxu3  ;;  %v2080_v22 = vld [vmem:[#allocation16_spill] sm:$0xff] }
 0x22c   : > { %v895_v24 = vmax.f32 %v2080_v22, 0.0  ;;  %v1058_v22 = vld [vmem:[#allocation7] sm:$0xff] }
 0x22d   : > { %v1003_v46 = vadd.f32 %v1002_v14, %v876_v36  ;;  %v2081_v14 = vld [vmem:[#allocation17_spill] sm:$0xff] }
 0x22f   : > { %v1004_v43 = vadd.f32 %v1003_v46, %v877_v49  ;;  %v896_v49 = vmax.f32 %v2081_v14, 0.0  ;;  %v916_v14 = vmax.f32 %v1985_v35, 0.0 }
 0x231   : > { %v1005_v60 = vadd.f32 %v1004_v43, %v878_v30  ;;  %v897_v30 = vmax.f32 %v2082_v6, 0.0 }
 0x233   : > { %v1006_v8 = vadd.f32 %v1005_v60, %v879_v52  ;;  %v778_v36 = vpop.f32.mrf.mxu3  ;;  %v2083_v52 = vld [vmem:[#allocation19_spill] sm:$0xff] }
 0x234   : > { %v898_v60 = vmax.f32 %v2083_v52, 0.0 }
 0x235   : > { %v1007_v17 = vadd.f32 %v1006_v8, %v880_v1  ;;  %v2084_v8 = vld [vmem:[#allocation20_spill] sm:$0xff] }
 0x237   : > { %v1008_v23 = vadd.f32 %v1007_v17, %v881_v10  ;;  %v899_v10 = vmax.f32 %v2084_v8, 0.0 }
 0x239   : > { %v1009_v31 = vadd.f32 %v1008_v23, %v882_v21  ;;  %v2085_v21 = vld [vmem:[#allocation21_spill] sm:$0xff] }
 0x23a   : > { %v900_v23 = vmax.f32 %v2085_v21, 0.0 }
 0x23b   : > { %v1010_v41 = vadd.f32 %v1009_v31, %v883_v47  ;;  %v781_v31 = vpop.f32.mrf.mxu3  ;;  %v2086_v47 = vld [vmem:[#allocation23_spill] sm:$0xff] }
 0x23d   : > { %v1011_v11 = vadd.f32 %v1010_v41, %v884_v40  ;;  %v901_v41 = vmax.f32 %v2086_v47, 0.0  ;;  %v1074_v47 = vld [vmem:[%s2056_s3] sm:$0x1] }
 0x23f   : > { %v1012_v56 = vadd.f32 %v1011_v11, %v885_v28  ;;  %v1062_v11 = vld [vmem:[#allocation7 + $0x20] sm:$0xff]  ;;  %v902_v28 = vmax.f32 %v1879_v58, 0.0  ;;  %v907_v58 = vmax.f32 %v1921_v20, 0.0 }
 0x240   : > { %1086 = vmatpush.msrb.mxu1 %v1062_v11 }
 0x241   : > { %v1013_v59 = vadd.f32 %v1012_v56, %v886_v50  ;;  %v1061_v50 = vld [vmem:[#allocation7 + $0x18] sm:$0xff] }
 0x242   : > { %1087 = vmatpush.msrb.mxu1 %v1061_v50 }
 0x243   : > { %v1014_v5 = vadd.f32 %v1013_v59, %v887_v42  ;;  %v903_v59 = vmax.f32 %v1884_v53, 0.0  ;;  %v908_v53 = vmax.f32 %v1927_v7, 0.0 }
 0x245   : > { %v1015_v54 = vadd.f32 %v1014_v5, %v888_v4  ;;  %v1060_v4 = vld [vmem:[#allocation7 + $0x10] sm:$0xff] }
 0x246   : > { %1088 = vmatpush.msrb.mxu1 %v1060_v4 }
 0x247   : > { %v1016_v29 = vadd.f32 %v1015_v54, %v889_v2  ;;  %v905_v54 = vmax.f32 %v1903_v38, 0.0 }
 0x249   : > { %v1017_v26 = vadd.f32 %v1016_v29, %v890_v16  ;;  %v784_v16 = vpop.f32.mrf.mxu3  ;;  %v906_v29 = vmax.f32 %v1912_v18, 0.0  ;;  %v912_v18 = vmax.f32 %v1957_v32, 0.0 }
 0x24b   : > { %v1018_v15 = vadd.f32 %v1017_v26, %v891_v62  ;;  %v1059_v62 = vld [vmem:[#allocation7 + $0x8] sm:$0xff] }
 0x24c   : > { %1089 = vmatpush.msrb.mxu1 %v1059_v62 }
 0x24d   : > { %v1019_v45 = vadd.f32 %v1018_v15, %v892_v57  ;;  %v910_v15 = vmax.f32 %v1941_v12, 0.0 }
 0x24e   : > { %1090 = vmatpush.msrb.mxu1 %v1058_v22 }
 0x24f   : > { %v1020_v25 = vadd.f32 %v1019_v45, %v893_v63  ;;  %v911_v63 = vmax.f32 %v1948_v27, 0.0 }
 0x251   : > { %v1021_v3 = vadd.f32 %v1020_v25, %v894_v13  ;;  %v787_v38 = vpop.f32.mrf.mxu3  ;;  %v913_v13 = vmax.f32 %v1964_v51, 0.0  ;;  %v914_v25 = vmax.f32 %v1971_v61, 0.0  ;;  %v919_v51 = vmax.f32 %v781_v31, 0.0 }
 0x253   : > { %v1022_v46 = vadd.f32 %v1021_v3, %v895_v24 }
 0x255   : > { %v1023_v43 = vadd.f32 %v1022_v46, %v896_v49  ;;  %v917_v49 = vmax.f32 %v1987_v33, 0.0  ;;  %v918_v46 = vmax.f32 %v778_v36, 0.0 }
 0x257   : > { %v1024_v1 = vadd.f32 %v1023_v43, %v897_v30  ;;  %v920_v43 = vmax.f32 %v784_v16, 0.0 }
 0x259   : > { %v1025_v17 = vadd.f32 %v1024_v1, %v898_v60  ;;  %v790_v12 = vpop.f32.mrf.mxu3  ;;  %v921_v60 = vmax.f32 %v787_v38, 0.0 }
 0x25a   : > { %v922_v1 = vmax.f32 %v790_v12, 0.0 }
 0x25b   : > { %v1026_v44 = vadd.f32 %v1025_v17, %v899_v10 }
 0x25d   : > { %v1027_v40 = vadd.f32 %v1026_v44, %v900_v23 }
 0x25f   : > { %v1028_v56 = vadd.f32 %v1027_v40, %v901_v41 }
 0x261   : > { %v1029_v42 = vadd.f32 %v1028_v56, %v902_v28  ;;  %v793_v61 = vpop.f32.mrf.mxu3 }
 0x262   : > { %v923_v8 = vmax.f32 %v793_v61, 0.0 }
 0x263   : > { %v1030_v5 = vadd.f32 %v1029_v42, %v903_v59 }
 0x265   : > { %v1031_v2 = vadd.f32 %v1030_v5, %v904_v9 }
 0x267   : > { %v1032_v19 = vadd.f32 %v1031_v2, %v905_v54 }
 0x269   : > { %v1033_v26 = vadd.f32 %v1032_v19, %v906_v29 }
 0x26b   : > { %v1034_v39 = vadd.f32 %v1033_v26, %v907_v58 }
 0x26d   : > { %v1035_v57 = vadd.f32 %v1034_v39, %v908_v53 }
 0x26f   : > { %v1036_v48 = vadd.f32 %v1035_v57, %v909_v34 }
 0x271   : > { %v1037_v45 = vadd.f32 %v1036_v48, %v910_v15 }
 0x273   : > { %v1038_v55 = vadd.f32 %v1037_v45, %v911_v63 }
 0x275   : > { %v1039_v20 = vadd.f32 %v1038_v55, %v912_v18 }
 0x277   : > { %v1040_v7 = vadd.f32 %v1039_v20, %v913_v13 }
 0x279   : > { %v1041_v24 = vadd.f32 %v1040_v7, %v914_v25 }
 0x27b   : > { %v1042_v3 = vadd.f32 %v1041_v24, %v915_v37 }
 0x27d   : > { %v1043_v27 = vadd.f32 %v1042_v3, %v916_v14 }
 0x27f   : > { %v1044_v32 = vadd.f32 %v1043_v27, %v917_v49 }
 0x281   : > { %v1045_v6 = vadd.f32 %v1044_v32, %v918_v46 }
 0x283   : > { %v1046_v30 = vadd.f32 %v1045_v6, %v919_v51 }
 0x285   : > { %v1047_v52 = vadd.f32 %v1046_v30, %v920_v43 }
 0x287   : > { %v1048_v0 = vadd.f32 %v1047_v52, %v921_v60 }
 0x289   : > { %v1049_v10 = vadd.f32 %v1048_v0, %v922_v1 }
 0x28b   : > { %v1050_v17 = vadd.f32 %v1049_v10, %v923_v8 }
 0x28d   : > { %v1051_v35 = vrot.slane %v1050_v17, 4 }
 0x28f   : > { %v1052_v21 = vadd.f32 %v1051_v35, %v1050_v17 }
 0x291   : > { %v1053_v23 = vrot.slane %v1052_v21, 2 }
 0x293   : > { %v1054_v33 = vadd.f32 %v1053_v23, %v1052_v21 }
 0x295   : > { %v1055_v36 = vrot.slane %v1054_v33, 1 }
 0x297   : > { %v1056_v44 = vadd.f32 %v1055_v36, %v1054_v33 }
 0x299   : > { %v1057_v31 = vmul.f32 0.0009765625, %v1056_v44 }
 0x29b   : > { %1091 = vmatmul.f32.vlgmr.msrb.gmra.mxu1 %v1057_v31 }
 0x318   : > { %v1092_v41 = vpop.f32.mrf.mxu1 }
 0x319   : > { %v1093_v40 = vadd.f32 %v1092_v41, %v1074_v47 }
 0x31b   : > { %1095 = vst [vmem:[%s249_s5] sm:$0x1] %v1093_v40 }
 0x31c   : > { %1443 = shalt.err (!%p1440_p10)
}
 0x31d   : > { %1267 = dma.vmem_to_hbm [thread:$0]  (%p1589_p3), %s1108_s8, 16, %s1110_s9, %s1097_s24  }
 0x31e PF: > { %s1121_s20 = sand.u32 1, %s1474_s15   ;;  %p2087_p12 = scmp.ge.s32.totalorder %s1486_s18, 2 }
 0x31f   : > { %s1122_s12 = scalar_lea.sflag [#allocation4], %s1121_s20 }
 0x320   : > { %p1281_p13 = pnand %p2087_p12, %p1552_p6 }
 0x322   : > { %p1282_p0 = pneg %p1281_p13 }
 0x324   : > { %1469 = dma.done.wait (%p1282_p0), %s1122_s12, 16  }
 0x325   : > { %1471 = vsyncadd (%p1282_p0), %s1122_s12, 4294967280  ;;  %p18_p5 = scmp.ge.s32.totalorder %s1579_s10, 4   ;;  %s2088_s15 = smov %s1478_s16 }
 0x326   : > { %s2089_s16 = smov %s1482_s17  ;;  %s2090_s17 = smov %s1595_s14 }
 0x327   : > { %s2091_s18 = smov %s1579_s10  ;;  %20 = sbr.rel (!%p18_p5) target bundleno = 6 (0x6), region = 89 }
 0x32c   :  { %1127 = vsyncpa [#allocation3], 1 }
 0x32d   :  { %1129 = vsyncpa [#allocation3 + $0x1], 1 }
 0x32e   :  { %1130 = vsyncpa [#allocation6], 1 }
 0x32f   :  { %1131 = vsyncpa [#allocation4], 1 }
 0x330   :  { %1133 = vsyncpa [#allocation4 + $0x1], 1 }

</bundles_post_ra>
